<compile_context>
chip_gen: v7x
topology: tpu7x:2x2x1
jax: 0.10.0
libtpu: 0.0.40
codegen_flags: <defaults>
</compile_context>

<pallas_src>
import functools

import jax
import jax.numpy as jnp
from jax.experimental import pallas as pl
from jax.experimental.pallas import tpu as pltpu

HIDDEN = 64     # logical hidden width of the MLP
H_PAD = 128     # lane-padded hidden width (multiple of 128)
W_GRAN = 16     # bf16 sublane-tile granule; row alignment of the packed params


def _round_up(n, m):
    return ((n + m - 1) // m) * m


def _controller_kernel(x_ref, p_ref, o_ref, *, in_pad, out_dim):
    """fc1 -> relu -> fc2 -> relu -> fc3 -> relu -> fc4, all in VMEM.

    Packed bf16 parameter row layout (all lane-padded to 128 columns):
      [0              : in_pad        ]  w1 augmented (row `input_dim` = b1)
      [in_pad         : in_pad + 128  ]  w2
      [in_pad + 128   : in_pad + 256  ]  w3
      [in_pad + 256   : in_pad + 384  ]  w4
      [in_pad + 384   : in_pad + 400  ]  bias block; rows 0..2 = b2..b4
    All offsets are static Python ints and multiples of 16 (bf16 tile rows).
    """
    o1 = in_pad
    o2 = o1 + H_PAD
    o3 = o2 + H_PAD
    o4 = o3 + H_PAD

    x = x_ref[...].astype(jnp.bfloat16)                      # (tb, in_pad)

    # Layer 1: bias folded into w1 via the augmented ones column of x.
    h = jnp.dot(x, p_ref[0:o1, :], preferred_element_type=jnp.float32)
    h = jnp.maximum(h, 0.0)

    bias = p_ref[o4:o4 + W_GRAN, :].astype(jnp.float32)      # rows 0..2 = b2..b4

    h = jnp.dot(h.astype(jnp.bfloat16), p_ref[o1:o2, :],
                preferred_element_type=jnp.float32) + bias[0:1, :]
    h = jnp.maximum(h, 0.0)

    h = jnp.dot(h.astype(jnp.bfloat16), p_ref[o2:o3, :],
                preferred_element_type=jnp.float32) + bias[1:2, :]
    h = jnp.maximum(h, 0.0)

    u = jnp.dot(h.astype(jnp.bfloat16), p_ref[o3:o4, :],
                preferred_element_type=jnp.float32) + bias[2:3, :]

    # Narrow store: only the real output lanes go back to HBM.
    o_ref[...] = u[:, :out_dim].astype(o_ref.dtype)


def pack_params(params, input_dim):
    """Pack all weights/biases into one bf16 (in_pad + 3*128 + 16, 128) buffer.

    Call this ONCE; reuse the packed buffer across forward calls.  Padded
    rows/cols are zero; b1 is folded into row `input_dim` of the augmented
    first-layer weight (the wrapper sets x[:, input_dim] = 1).
    """
    in_pad = _round_up(input_dim + 1, W_GRAN)

    w1 = jnp.zeros((in_pad, H_PAD), jnp.float32)
    w1 = w1.at[:input_dim, :HIDDEN].set(params["w1"].astype(jnp.float32))
    w1 = w1.at[input_dim, :HIDDEN].set(params["b1"].astype(jnp.float32))

    def pad_w(w):
        w = w.astype(jnp.float32)
        return jnp.pad(w, ((0, H_PAD - w.shape[0]), (0, H_PAD - w.shape[1])))

    w2, w3, w4 = pad_w(params["w2"]), pad_w(params["w3"]), pad_w(params["w4"])

    bias = jnp.zeros((W_GRAN, H_PAD), jnp.float32)
    bias = bias.at[0, :params["b2"].size].set(params["b2"].astype(jnp.float32))
    bias = bias.at[1, :params["b3"].size].set(params["b3"].astype(jnp.float32))
    bias = bias.at[2, :params["b4"].size].set(params["b4"].astype(jnp.float32))

    return jnp.concatenate([w1, w2, w3, w4, bias], axis=0).astype(jnp.bfloat16)


@functools.partial(jax.jit, static_argnames=("input_dim", "output_dim"))
def controller_forward(x, packed_params, input_dim, output_dim):
    """x: (B, input_dim) float. packed_params: output of pack_params()."""
    B = x.shape[0]
    in_pad = _round_up(input_dim + 1, W_GRAN)
    n_rows = in_pad + 3 * H_PAD + W_GRAN

    # Batch tiling: grid-less single block for small batches (pure
    # launch/DMA-latency regime); otherwise large MXU-friendly tiles, keeping
    # >= 2 "parallel" tiles so both v7x TensorCores get work when B allows it.
    b8 = _round_up(max(B, 8), 8)
    if b8 <= 256:
        tile_b, use_grid = b8, False
    elif b8 <= 512:
        tile_b, use_grid = 128, True
    else:
        tile_b, use_grid = 256, True
    b_pad = _round_up(b8, tile_b)

    # Pad features to in_pad (with the bias-fold "ones" column) and the batch
    # to a tile multiple.  Padded batch rows are sliced away below.
    x_p = jnp.pad(x.astype(jnp.float32),
                  ((0, b_pad - B), (0, in_pad - input_dim)))
    x_p = x_p.at[:, input_dim].set(1.0)

    kernel = functools.partial(_controller_kernel, in_pad=in_pad,
                               out_dim=output_dim)
    out_shape = jax.ShapeDtypeStruct((b_pad, output_dim), jnp.float32)

    if not use_grid:
        # Single block: whole arrays land in VMEM, no grid pipeline machinery.
        out = pl.pallas_call(kernel, out_shape=out_shape)(x_p, packed_params)
    else:
        out = pl.pallas_call(
            kernel,
            out_shape=out_shape,
            grid=(b_pad // tile_b,),
            in_specs=[
                # batch tile marches along the grid
                pl.BlockSpec((tile_b, in_pad), lambda i: (i, 0)),
                # constant index_map -> params DMA'd once, stay VMEM-resident
                pl.BlockSpec((n_rows, H_PAD), lambda i: (0, 0)),
            ],
            out_specs=pl.BlockSpec((tile_b, output_dim), lambda i: (i, 0)),
            compiler_params=pltpu.CompilerParams(
                dimension_semantics=("parallel",)),   # shards tiles on v7x's 2 TCs
        )(x_p, packed_params)

    return out if b_pad == B else out[:B]


def init_controller_params(key, input_dim, output_dim):
    """Deterministic init mimicking torch.nn.Linear default (U(-1/sqrt(fan_in), +))."""
    dims = [(input_dim, HIDDEN), (HIDDEN, HIDDEN), (HIDDEN, HIDDEN),
            (HIDDEN, output_dim)]
    params = {}
    for i, (fan_in, fan_out) in enumerate(dims, start=1):
        key, kw, kb = jax.random.split(key, 3)
        bound = float(fan_in) ** -0.5
        params[f"w{i}"] = jax.random.uniform(
            kw, (fan_in, fan_out), jnp.float32, -bound, bound)
        params[f"b{i}"] = jax.random.uniform(
            kb, (fan_out,), jnp.float32, -bound, bound)
    return params


def controller_forward_ref(x, params):
    """Pure-JAX full-f32 reference (mirrors the PyTorch module)."""
    h = x.astype(jnp.float32)
    for i in range(1, 4):
        h = jnp.maximum(h @ params[f"w{i}"] + params[f"b{i}"], 0.0)
    return h @ params["w4"] + params["b4"]


def controller_forward_ref_bf16(x, params):
    """Pure-JAX reference mirroring the kernel numerics: bf16 MXU operands,
    f32 accumulation."""
    h = x.astype(jnp.float32)
    for i in range(1, 5):
        w = params[f"w{i}"].astype(jnp.bfloat16)
        b = params[f"b{i}"].astype(jnp.bfloat16).astype(jnp.float32)
        h = jnp.dot(h.astype(jnp.bfloat16), w,
                    preferred_element_type=jnp.float32) + b
        if i < 4:
            h = jnp.maximum(h, 0.0)
    return h


if __name__ == "__main__":
    key = jax.random.PRNGKey(0)
    k_params, k_x1, k_x2, k_xb = jax.random.split(key, 4)

    input_dim, output_dim, batch = 4, 2, 2
    params = init_controller_params(k_params, input_dim, output_dim)
    packed = pack_params(params, input_dim)     # done once, reused

    # Mirror the reference script's x_start construction: 2 values in [-1, 1]
    # and 2 values in [-0.2, 0.2] per sample.
    x = jnp.concatenate(
        [jax.random.uniform(k_x1, (batch, 2), jnp.float32, -1.0, 1.0),
         jax.random.uniform(k_x2, (batch, 2), jnp.float32, -0.2, 0.2)],
        axis=1,
    )

    # Small-batch (grid-less) path.
    u = controller_forward(x, packed, input_dim, output_dim)
    jax.block_until_ready(u)
    assert u.shape == (batch, output_dim)
    assert jnp.allclose(u, controller_forward_ref_bf16(x, params),
                        atol=1e-2, rtol=1e-2)      # matches kernel numerics
    assert jnp.allclose(u, controller_forward_ref(x, params),
                        atol=5e-2, rtol=5e-2)      # full-f32 sanity check

    # Larger batch exercises the tiled, megacore-parallel grid path.
    xb = jax.random.uniform(k_xb, (384, input_dim), jnp.float32, -1.0, 1.0)
    ub = controller_forward(xb, packed, input_dim, output_dim)
    jax.block_until_ready(ub)
    assert ub.shape == (384, output_dim)
    assert jnp.allclose(ub, controller_forward_ref_bf16(xb, params),
                        atol=1e-2, rtol=1e-2)

    print("KERNEL_OK")
</pallas_src>

<mosaic_0001>
module attributes {stable_mosaic.version = 11 : i64} {
  func.func @_controller_kernel(%arg0: memref<8x16xf32, #tpu.memory_space<vmem>>, %arg1: memref<416x128xbf16, #tpu.memory_space<vmem>>, %arg2: memref<8x2xf32, #tpu.memory_space<vmem>>) attributes {dimension_semantics = [], scalar_prefetch = 0 : i64, scratch_operands = 0 : i64, tpu.core_type = #tpu.core_type<tc>} {
    %c0 = arith.constant 0 : index
    %c0_0 = arith.constant 0 : index
    %0 = vector.load %arg0[%c0, %c0_0] : memref<8x16xf32, #tpu.memory_space<vmem>>, vector<8x16xf32>
    %1 = arith.truncf %0 : vector<8x16xf32> to vector<8x16xbf16>
    %c0_1 = arith.constant 0 : index
    %c0_2 = arith.constant 0 : index
    %2 = vector.load %arg1[%c0_1, %c0_2] : memref<416x128xbf16, #tpu.memory_space<vmem>>, vector<16x128xbf16>
    %cst = arith.constant dense<0.000000e+00> : vector<8x128xf32>
    %3 = tpu.matmul %1, %2, %cst {dimension_numbers = #tpu.dot_dimension_numbers<[1], [0], [0], [1], [0, 0, 1, 1], [], []>} : vector<8x16xbf16>, vector<16x128xbf16>, vector<8x128xf32> -> vector<8x128xf32>
    %cst_3 = arith.constant 0.000000e+00 : f32
    %4 = vector.broadcast %cst_3 : f32 to vector<8x128xf32>
    %5 = arith.maximumf %3, %4 : vector<8x128xf32>
    %c400 = arith.constant 400 : index
    %c0_4 = arith.constant 0 : index
    %6 = vector.load %arg1[%c400, %c0_4] : memref<416x128xbf16, #tpu.memory_space<vmem>>, vector<16x128xbf16>
    %7 = arith.extf %6 : vector<16x128xbf16> to vector<16x128xf32>
    %8 = arith.truncf %5 : vector<8x128xf32> to vector<8x128xbf16>
    %c16 = arith.constant 16 : index
    %c0_5 = arith.constant 0 : index
    %9 = vector.load %arg1[%c16, %c0_5] : memref<416x128xbf16, #tpu.memory_space<vmem>>, vector<128x128xbf16>
    %cst_6 = arith.constant dense<0.000000e+00> : vector<8x128xf32>
    %10 = tpu.matmul %8, %9, %cst_6 {dimension_numbers = #tpu.dot_dimension_numbers<[1], [0], [0], [1], [0, 0, 1, 1], [], []>} : vector<8x128xbf16>, vector<128x128xbf16>, vector<8x128xf32> -> vector<8x128xf32>
    %11 = vector.extract_strided_slice %7 {offsets = [0, 0], sizes = [1, 128], strides = [1, 1]} : vector<16x128xf32> to vector<1x128xf32>
    %12 = vector.broadcast %11 : vector<1x128xf32> to vector<8x128xf32>
    %13 = arith.addf %10, %12 : vector<8x128xf32>
    %cst_7 = arith.constant 0.000000e+00 : f32
    %14 = vector.broadcast %cst_7 : f32 to vector<8x128xf32>
    %15 = arith.maximumf %13, %14 : vector<8x128xf32>
    %16 = arith.truncf %15 : vector<8x128xf32> to vector<8x128xbf16>
    %c144 = arith.constant 144 : index
    %c0_8 = arith.constant 0 : index
    %17 = vector.load %arg1[%c144, %c0_8] : memref<416x128xbf16, #tpu.memory_space<vmem>>, vector<128x128xbf16>
    %cst_9 = arith.constant dense<0.000000e+00> : vector<8x128xf32>
    %18 = tpu.matmul %16, %17, %cst_9 {dimension_numbers = #tpu.dot_dimension_numbers<[1], [0], [0], [1], [0, 0, 1, 1], [], []>} : vector<8x128xbf16>, vector<128x128xbf16>, vector<8x128xf32> -> vector<8x128xf32>
    %19 = vector.extract_strided_slice %7 {offsets = [1, 0], sizes = [1, 128], strides = [1, 1]} : vector<16x128xf32> to vector<1x128xf32>
    %20 = vector.broadcast %19 : vector<1x128xf32> to vector<8x128xf32>
    %21 = arith.addf %18, %20 : vector<8x128xf32>
    %cst_10 = arith.constant 0.000000e+00 : f32
    %22 = vector.broadcast %cst_10 : f32 to vector<8x128xf32>
    %23 = arith.maximumf %21, %22 : vector<8x128xf32>
    %24 = arith.truncf %23 : vector<8x128xf32> to vector<8x128xbf16>
    %c272 = arith.constant 272 : index
    %c0_11 = arith.constant 0 : index
    %25 = vector.load %arg1[%c272, %c0_11] : memref<416x128xbf16, #tpu.memory_space<vmem>>, vector<128x128xbf16>
    %cst_12 = arith.constant dense<0.000000e+00> : vector<8x128xf32>
    %26 = tpu.matmul %24, %25, %cst_12 {dimension_numbers = #tpu.dot_dimension_numbers<[1], [0], [0], [1], [0, 0, 1, 1], [], []>} : vector<8x128xbf16>, vector<128x128xbf16>, vector<8x128xf32> -> vector<8x128xf32>
    %27 = vector.extract_strided_slice %7 {offsets = [2, 0], sizes = [1, 128], strides = [1, 1]} : vector<16x128xf32> to vector<1x128xf32>
    %28 = vector.broadcast %27 : vector<1x128xf32> to vector<8x128xf32>
    %29 = arith.addf %26, %28 : vector<8x128xf32>
    %30 = vector.extract_strided_slice %29 {offsets = [0, 0], sizes = [8, 2], strides = [1, 1]} : vector<8x128xf32> to vector<8x2xf32>
    %c0_13 = arith.constant 0 : index
    %c0_14 = arith.constant 0 : index
    %31 = vector.load %arg2[%c0_13, %c0_14] : memref<8x2xf32, #tpu.memory_space<vmem>>, vector<8x2xf32>
    tpu.vector_store %arg2[%c0_13, %c0_14], %30 {strides = array<i32>} : memref<8x2xf32, #tpu.memory_space<vmem>>, vector<8x2xf32>,
    return
  }
}

</mosaic_0001>

<bundles_post_ra>
// kernel: controller_forward.1
= control target key start
LH: loop header
LB: loop body
LE: loop exit
PB: predicated region body
PF: predicated region fallthrough
CT: control target
= control target key end

     0   :  { %7 = vsyncpa [#allocation3], 0  ;;  %s594_s9 = smov [#allocation2]   ;;  %s665_s0 = inlined_call_operand.vmem [shape: f32[8,16], index: 0, kind: input, shape index: {}]   ;;  %s666_s1 = inlined_call_operand.hbm [shape: bf16[416,128], index: 1, kind: input, shape index: {}]   ;;  %s667_s2 = inlined_call_operand.vmem [shape: f32[8,2], index: 2, kind: output, shape index: {}]  }
   0x1   :  { %s15_s10 = sshll.u32 %s594_s9, 4  ;;  %s570_s13 = scalar_lea.hbm %s666_s1, 3328  ;;  %s16_s10 = int_to_ptr.vmem [resolvable:$true] %s15_s10 }
   0x2   :  { %p571_p0 = scmp.ne.s32.totalorder %s666_s1, %s570_s13  ;;  %p574_p1 = scmp.lt.u32.totalorder %s570_s13, %s666_s1 }
   0x4   :  { %p576_p2 = pnand %p574_p1, %p571_p0 }
   0x6   :  { %579 = shalt.err (!%p576_p2)
}
   0x7   :  { %s580_s18 = scalar_lea.vmem %s16_s10, 3328  ;;  %p585_p4 = scmp.lt.s32.totalorder %s16_s10, %s16_s10 }
   0x8   :  { %p581_p3 = scmp.ne.s32.totalorder %s16_s10, %s580_s18  ;;  %p586_p5 = scmp.lt.s32.totalorder %s580_s18, %s580_s18 }
   0xa   :  { %p587_p6 = por %p586_p5, %p585_p4 }
   0xc   :  { %p588_p7 = pnand %p587_p6, %p581_p3 }
   0xe   :  { %591 = shalt.err (!%p588_p7)
}
   0xf   :  { %s595_s19 = smov 64   ;;  %s596_s20 = smov 4  }
  0x10   :  { %21 = dma.hbm_to_vmem [thread:$0]  %s666_s1, 3328, %s16_s10, [#allocation3], %s595_s19, %s595_s19, %s596_s20  }
  0x11   :  { %592 = dma.done.wait [#allocation3], 3328  }
  0x12   :  { %593 = vsyncadd [#allocation3], 4294963968  ;;  %v597_v0 = vmov 0.0   ;;  %vm598_vm0 = vmmov 0   ;;  %v545_v1 = vld [vmem:[#allocation2] sm:$0xff]   ;;  %vm36_vm1 = vcmask 130048   ;;  %v100_v32 = vlaneseq }
  0x13   :  { %474 = vmatprep.subr.bf16.mxu0 %v597_v0  ;;  %476 = vmatprep.mubr.msk.bf16.mxu0 %vm598_vm0, %v597_v0  ;;  %v26_v2 = vld [vmem:[%s665_s0] sm:$0xff]  ;;  %v546_v4 = vld [vmem:[#allocation2 + $0x8] sm:$0xff]   ;;  %v547_v5 = vld [vmem:[#allocation2 + $0x10] sm:$0xff]   ;;  %vm412_vm2 = vcmask 15360  }
  0x14   :  { %480 = vmatprep.subr.bf16.mxu1 %v597_v0  ;;  %496 = vmatprep.mubr.msk.bf16.mxu1 %vm598_vm0, %v597_v0  ;;  %v27_v3 = vpack.c.bf16 %v26_v2, %v26_v2  ;;  %v548_v6 = vld [vmem:[#allocation2 + $0x18] sm:$0xff]   ;;  %v549_v7 = vld [vmem:[#allocation2 + $0x20] sm:$0xff]   ;;  %v550_v8 = vld [vmem:[#allocation2 + $0x28] sm:$0xff]   ;;  %v101_v33 = vshrl.u32 %v100_v32, 7 }
  0x15   :  { %475 = vmatpush3.bf16.msra.mxu0 %v545_v1  ;;  %481 = vmatpush3.bf16.msra.mxu1 %v546_v4  ;;  %v551_v9 = vld [vmem:[#allocation2 + $0x30] sm:$0xff]   ;;  %v552_v10 = vld [vmem:[#allocation2 + $0x38] sm:$0xff]   ;;  %v553_v11 = vld [vmem:[#allocation2 + $0x40] sm:$0xff]  }
  0x16   :  { %500 = vmatprep.subr.bf16.mxu0 %v597_v0  ;;  %482 = vmatprep.subr.bf16.mxu1 %v597_v0  ;;  %v554_v12 = vld [vmem:[#allocation2 + $0x48] sm:$0xff]   ;;  %v555_v13 = vld [vmem:[#allocation2 + $0x50] sm:$0xff]   ;;  %v556_v14 = vld [vmem:[#allocation2 + $0x58] sm:$0xff]   ;;  %v102_v36 = vsub.s32 0, %v101_v33  ;;  %v212_v47 = vsub.s32 1, %v101_v33  ;;  %v322_v56 = vsub.s32 2, %v101_v33 }
  0x17   :  { %v557_v15 = vld [vmem:[#allocation2 + $0x60] sm:$0xff]   ;;  %v558_v16 = vld [vmem:[#allocation2 + $0x68] sm:$0xff]   ;;  %v559_v17 = vld [vmem:[#allocation2 + $0x70] sm:$0xff]  }
  0x18   :  { %477 = vmatmul.mubr.msk.bf16.vlgmr.msra.gmra.mrb[0].mxu0 %vm36_vm1, %v27_v3  ;;  %v560_v24 = vld [vmem:[#allocation2 + $0x78] sm:$0xff]   ;;  %v561_v25 = vld [vmem:[#allocation2 + $0x80] sm:$0xff]   ;;  %v562_v26 = vld [vmem:[#allocation2 + $0x88] sm:$0xff]  }
  0x19   :  { %516 = vmatprep.mubr.msk.bf16.mxu0 %vm598_vm0, %v597_v0  ;;  %483 = vmatpush3.bf16.msra.mxu1 %v547_v5  ;;  %v563_v27 = vld [vmem:[#allocation2 + $0x90] sm:$0xff]   ;;  %v564_v28 = vld [vmem:[#allocation2 + $0x98] sm:$0xff]   ;;  %v565_v29 = vld [vmem:[#allocation2 + $0xa0] sm:$0xff]  }
  0x1a   :  { %484 = vmatprep.subr.bf16.mxu1 %v597_v0  ;;  %501 = vmatpush3.bf16.msra.mxu0 %v554_v12  ;;  %v566_v30 = vld [vmem:[#allocation2 + $0xa8] sm:$0xff]   ;;  %v567_v31 = vld [vmem:[#allocation2 + $0xb0] sm:$0xff]   ;;  %v568_v45 = vld [vmem:[#allocation2 + $0xb8] sm:$0xff]  }
  0x1b   :  { %502 = vmatprep.subr.bf16.mxu0 %v597_v0  ;;  %v81_v34 = vld [vmem:[#allocation2 + $0xc8] sm:$0xf]  ;;  %v569_v46 = vld [vmem:[#allocation2 + $0xc0] sm:$0xff]  }
  0x1c   :  { %v82_v35 = vunpack.c.l.bf16 %v81_v34 }
  0x1d   :  { %485 = vmatpush3.bf16.msra.mxu1 %v548_v6 }
  0x1e   :  { %486 = vmatprep.subr.bf16.mxu1 %v597_v0  ;;  %503 = vmatpush3.bf16.msra.mxu0 %v555_v13  ;;  %v103_v37 = vrot.slane %v82_v35, %v102_v36  ;;  %v213_v48 = vrot.slane %v82_v35, %v212_v47  ;;  %v323_v57 = vrot.slane %v82_v35, %v322_v56 }
  0x1f   :  { %504 = vmatprep.subr.bf16.mxu0 %v597_v0 }
  0x21   :  { %487 = vmatpush3.bf16.msra.mxu1 %v549_v7 }
  0x22   :  { %488 = vmatprep.subr.bf16.mxu1 %v597_v0  ;;  %505 = vmatpush3.bf16.msra.mxu0 %v556_v14 }
  0x23   :  { %506 = vmatprep.subr.bf16.mxu0 %v597_v0 }
  0x25   :  { %489 = vmatpush3.bf16.msra.mxu1 %v550_v8 }
  0x26   :  { %490 = vmatprep.subr.bf16.mxu1 %v597_v0  ;;  %507 = vmatpush3.bf16.msra.mxu0 %v557_v15 }
  0x27   :  { %508 = vmatprep.subr.bf16.mxu0 %v597_v0 }
  0x29   :  { %491 = vmatpush3.bf16.msra.mxu1 %v551_v9 }
  0x2a   :  { %492 = vmatprep.subr.bf16.mxu1 %v597_v0  ;;  %509 = vmatpush3.bf16.msra.mxu0 %v558_v16 }
  0x2b   :  { %510 = vmatprep.subr.bf16.mxu0 %v597_v0 }
  0x2d   :  { %493 = vmatpush3.bf16.msra.mxu1 %v552_v10 }
  0x2e   :  { %494 = vmatprep.subr.bf16.mxu1 %v597_v0  ;;  %511 = vmatpush3.bf16.msra.mxu0 %v559_v17 }
  0x2f   :  { %512 = vmatprep.subr.bf16.mxu0 %v597_v0 }
  0x31   :  { %495 = vmatpush3.bf16.msra.mxu1 %v553_v11 }
  0x32   :  { %520 = vmatprep.subr.bf16.mxu1 %v597_v0  ;;  %513 = vmatpush3.bf16.msra.mxu0 %v560_v24 }
  0x33   :  { %514 = vmatprep.subr.bf16.mxu0 %v597_v0 }
  0x36   :  { %515 = vmatpush3.bf16.msra.mxu0 %v561_v25 }
  0xeb   :  { %v74_v18 = vpop.f32.mrb[0].mxu0 }
  0xec   :  { %v80_v19 = vmax.f32 %v74_v18, 0.0  ;;  %v478_v20 = vpop.f32.mrb[1].mxu0 }
  0xed   :  { %v77_v21 = vpop.f32.mrb[2].mxu0 }
  0xee   :  { %v83_v22 = vpack.c.bf16 %v80_v19, %v80_v19  ;;  %v479_v23 = vpop.f32.mrb[3].mxu0 }
  0xf0   :  { %497 = vmatmul.mubr.bf16.vlgmr.msra.gmra.mrb[0].mxu1 %v83_v22 }
  0xf1   :  { %536 = vmatprep.mubr.msk.bf16.mxu1 %vm598_vm0, %v597_v0  ;;  %521 = vmatpush3.bf16.msra.mxu1 %v562_v26 }
  0xf2   :  { %522 = vmatprep.subr.bf16.mxu1 %v597_v0 }
  0xf5   :  { %523 = vmatpush3.bf16.msra.mxu1 %v563_v27 }
  0xf6   :  { %524 = vmatprep.subr.bf16.mxu1 %v597_v0 }
  0xf9   :  { %525 = vmatpush3.bf16.msra.mxu1 %v564_v28 }
  0xfa   :  { %526 = vmatprep.subr.bf16.mxu1 %v597_v0 }
  0xfd   :  { %527 = vmatpush3.bf16.msra.mxu1 %v565_v29 }
  0xfe   :  { %528 = vmatprep.subr.bf16.mxu1 %v597_v0 }
 0x101   :  { %529 = vmatpush3.bf16.msra.mxu1 %v566_v30 }
 0x102   :  { %530 = vmatprep.subr.bf16.mxu1 %v597_v0 }
 0x105   :  { %531 = vmatpush3.bf16.msra.mxu1 %v567_v31 }
 0x106   :  { %532 = vmatprep.subr.bf16.mxu1 %v597_v0 }
 0x109   :  { %533 = vmatpush3.bf16.msra.mxu1 %v568_v45 }
 0x10a   :  { %534 = vmatprep.subr.bf16.mxu1 %v597_v0 }
 0x10d   :  { %535 = vmatpush3.bf16.msra.mxu1 %v569_v46 }
 0x1c3   :  { %v186_v38 = vpop.f32.mrb[0].mxu1 }
 0x1c4   :  { %v187_v39 = vadd.f32 %v186_v38, %v103_v37  ;;  %v498_v40 = vpop.f32.mrb[1].mxu1 }
 0x1c5   :  { %v189_v41 = vpop.f32.mrb[2].mxu1 }
 0x1c6   :  { %v192_v42 = vmax.f32 %v187_v39, 0.0  ;;  %v499_v43 = vpop.f32.mrb[3].mxu1 }
 0x1c8   :  { %v193_v44 = vpack.c.bf16 %v192_v42, %v192_v42 }
 0x1ca   :  { %517 = vmatmul.mubr.bf16.vlgmr.msra.gmra.mrb[4].mxu0 %v193_v44 }
 0x29d   :  { %v296_v49 = vpop.f32.mrb[4].mxu0 }
 0x29e   :  { %v297_v50 = vadd.f32 %v296_v49, %v213_v48  ;;  %v518_v51 = vpop.f32.mrb[5].mxu0 }
 0x29f   :  { %v299_v52 = vpop.f32.mrb[6].mxu0 }
 0x2a0   :  { %v302_v53 = vmax.f32 %v297_v50, 0.0  ;;  %v519_v54 = vpop.f32.mrb[7].mxu0 }
 0x2a2   :  { %v303_v55 = vpack.c.bf16 %v302_v53, %v302_v53 }
 0x2a4   :  { %537 = vmatmul.mubr.bf16.vlgmr.msra.gmra.mrb[4].mxu1 %v303_v55 }
 0x377   :  { %v406_v58 = vpop.f32.mrb[4].mxu1 }
 0x378   :  { %v407_v59 = vadd.f32 %v406_v58, %v323_v57  ;;  %v538_v60 = vpop.f32.mrb[5].mxu1 }
 0x379   :  { %v409_v61 = vpop.f32.mrb[6].mxu1 }
 0x37a   :  { %413 = vst.msk [vmem:[%s667_s2] sm:$0xff] %vm412_vm2, %v407_v59  ;;  %v539_v62 = vpop.f32.mrb[7].mxu1 }
 0x37b   :  { %418 = vsyncpa [#allocation3], 1 }

</bundles_post_ra>
